<compile_context>
chip_gen: v5e
topology: v5e:2x2
jax: 0.10.0
libtpu: 0.0.40
codegen_flags: <defaults>
</compile_context>

<pallas_src>
import jax
import jax.numpy as jnp
from jax.experimental import pallas as pl
from jax.experimental.pallas import tpu as pltpu

LN_EPS = 1e-5
LANE = 128


def _round_up(n, m):
    return ((n + m - 1) // m) * m


def head_kernel(x_ref, ln_ref, w_ref, b_ref, o_ref):
    # x_ref : (TB, H)   CLS-token activations
    # ln_ref: (2, H)    row 0 = LayerNorm weight, row 1 = LayerNorm bias
    # w_ref : (H, CP)   fc weight, transposed + lane-padded
    # b_ref : (1, CP)   fc bias, lane-padded
    # o_ref : (TB, CP)  lane-dense logits (padded)
    x = x_ref[...]
    ln_w = ln_ref[0:1, :]                      # (1, H) — broadcasts over rows
    ln_b = ln_ref[1:2, :]

    mu = jnp.mean(x, axis=-1, keepdims=True)
    xc = x - mu
    var = jnp.mean(xc * xc, axis=-1, keepdims=True)
    xn = xc * jax.lax.rsqrt(var + LN_EPS) * ln_w + ln_b

    o_ref[...] = (
        jnp.dot(xn, w_ref[...], preferred_element_type=jnp.float32) + b_ref[...]
    )


def cm2_linear_classifier_head(x, params, *, batch_tile=256):
    """x: (B, S, H) f32.  params: PyTorch layout (fc_w: (C, H), fc_b: (C,), ln_w/ln_b: (H,))."""
    B, S, H = x.shape
    fc_w = params["fc_w"]
    fc_b = params["fc_b"]
    C = fc_w.shape[0]
    CP = _round_up(C, LANE)                    # lane-dense output width

    # CLS-token slice (layout plumbing, done host-side so the kernel sees (TB, H) blocks).
    x_cls = x[:, 0, :].astype(jnp.float32)     # (B, H)

    # Batch tiling: TB rows per grid step, pad B up to a multiple of TB.
    TB = min(batch_tile, B)
    Bp = _round_up(B, TB)
    if Bp != B:
        x_cls = jnp.pad(x_cls, ((0, Bp - B), (0, 0)))

    # Packed / pre-laid-out parameters.
    ln_packed = jnp.stack(
        [params["ln_w"], params["ln_b"]], axis=0
    ).astype(jnp.float32)                                                  # (2, H)
    w_pad = jnp.zeros((H, CP), jnp.float32).at[:, :C].set(fc_w.T.astype(jnp.float32))
    b_pad = jnp.zeros((1, CP), jnp.float32).at[:, :C].set(fc_b.astype(jnp.float32))

    out = pl.pallas_call(
        head_kernel,
        out_shape=jax.ShapeDtypeStruct((Bp, CP), jnp.float32),
        grid_spec=pltpu.PrefetchScalarGridSpec(
            num_scalar_prefetch=0,
            grid=(Bp // TB,),
            in_specs=[
                pl.BlockSpec((TB, H), lambda i: (i, 0)),
                pl.BlockSpec((2, H), lambda i: (0, 0)),
                pl.BlockSpec((H, CP), lambda i: (0, 0)),
                pl.BlockSpec((1, CP), lambda i: (0, 0)),
            ],
            out_specs=pl.BlockSpec((TB, CP), lambda i: (i, 0)),
        ),
        compiler_params=pltpu.CompilerParams(dimension_semantics=("parallel",)),
    )(x_cls, ln_packed, w_pad, b_pad)

    return out[:B, :C]


# ---------------- pure-JAX reference (for correctness check) ----------------
def ref_forward(x, params):
    y = x[:, 0, :]
    mu = y.mean(-1, keepdims=True)
    var = ((y - mu) ** 2).mean(-1, keepdims=True)
    yn = (y - mu) / jnp.sqrt(var + LN_EPS) * params["ln_w"] + params["ln_b"]
    return yn @ params["fc_w"].T + params["fc_b"]


def init_params(key, num_class, hidden_dim=128):
    out_dim = 1 if num_class <= 2 else num_class
    k1, k2, k3, k4 = jax.random.split(key, 4)
    bound = 1.0 / (hidden_dim ** 0.5)
    return {
        "ln_w": 1.0 + 0.1 * jax.random.normal(k3, (hidden_dim,), jnp.float32),
        "ln_b": 0.1 * jax.random.normal(k4, (hidden_dim,), jnp.float32),
        "fc_w": jax.random.uniform(k1, (out_dim, hidden_dim), jnp.float32, -bound, bound),
        "fc_b": jax.random.uniform(k2, (out_dim,), jnp.float32, -bound, bound),
    }


if __name__ == "__main__":
    H = 128                                    # module default hidden_dim
    key = jax.random.PRNGKey(0)
    kx, kp1, kp2, kx2 = jax.random.split(key, 4)

    # --- small multiclass head: B=2, S=8, num_class=7 -> fc: 128 -> 7 ---
    B, S = 2, 8
    x = jax.random.normal(kx, (B, S, H), jnp.float32)
    p_multi = init_params(kp1, num_class=7, hidden_dim=H)
    out_multi = jax.block_until_ready(cm2_linear_classifier_head(x, p_multi))
    ref_multi = ref_forward(x, p_multi)
    assert out_multi.shape == (B, 7)
    assert jnp.allclose(out_multi, ref_multi, atol=1e-4, rtol=1e-4), \
        "multiclass head mismatch vs JAX reference"

    # --- binary head: num_class=2 -> fc: 128 -> 1 ---
    p_bin = init_params(kp2, num_class=2, hidden_dim=H)
    out_bin = jax.block_until_ready(cm2_linear_classifier_head(x, p_bin))
    ref_bin = ref_forward(x, p_bin)
    assert out_bin.shape == (B, 1)
    assert jnp.allclose(out_bin, ref_bin, atol=1e-4, rtol=1e-4), \
        "binary head mismatch vs JAX reference"

    # --- larger batch exercising multi-step grid + batch padding (B=300 -> TB=256, 2 steps) ---
    B2, S2 = 300, 4
    x_big = jax.random.normal(kx2, (B2, S2, H), jnp.float32)
    out_big = jax.block_until_ready(cm2_linear_classifier_head(x_big, p_multi))
    ref_big = ref_forward(x_big, p_multi)
    assert out_big.shape == (B2, 7)
    assert jnp.allclose(out_big, ref_big, atol=1e-4, rtol=1e-4), \
        "batched head mismatch vs JAX reference"

    print("KERNEL_OK")
</pallas_src>

<mosaic_0001>
module attributes {stable_mosaic.version = 11 : i64} {
  func.func @head_kernel(%arg0: i32, %arg1: memref<2x128xf32, #tpu.memory_space<vmem>>, %arg2: memref<2x128xf32, #tpu.memory_space<vmem>>, %arg3: memref<128x128xf32, #tpu.memory_space<vmem>>, %arg4: memref<1x128xf32, #tpu.memory_space<vmem>>, %arg5: memref<2x128xf32, #tpu.memory_space<vmem>>) attributes {dimension_semantics = [#tpu.dimension_semantics<parallel>], iteration_bounds = array<i64: 1>, scalar_prefetch = 0 : i64, scratch_operands = 0 : i64, tpu.core_type = #tpu.core_type<tc>, window_params = [{transform_indices = @transform_0, window_bounds = array<i64: 2, 128>}, {pipeline_mode = #tpu.pipeline_mode<synchronous>, transform_indices = @transform_1, window_bounds = array<i64: 2, 128>}, {pipeline_mode = #tpu.pipeline_mode<synchronous>, transform_indices = @transform_2, window_bounds = array<i64: 128, 128>}, {pipeline_mode = #tpu.pipeline_mode<synchronous>, transform_indices = @transform_3, window_bounds = array<i64: 1, 128>}, {transform_indices = @transform_4, window_bounds = array<i64: 2, 128>}]} {
    %c0 = arith.constant 0 : index
    %c0_0 = arith.constant 0 : index
    %0 = vector.load %arg1[%c0, %c0_0] : memref<2x128xf32, #tpu.memory_space<vmem>>, vector<2x128xf32>
    %c0_1 = arith.constant 0 : index
    %c0_2 = arith.constant 0 : index
    %1 = vector.load %arg2[%c0_1, %c0_2] : memref<2x128xf32, #tpu.memory_space<vmem>>, vector<1x128xf32>
    %c1 = arith.constant 1 : index
    %c0_3 = arith.constant 0 : index
    %2 = vector.load %arg2[%c1, %c0_3] : memref<2x128xf32, #tpu.memory_space<vmem>>, vector<1x128xf32>
    %cst = arith.constant dense<0.000000e+00> : vector<2xf32>
    %3 = vector.multi_reduction <add>, %0, %cst [1] : vector<2x128xf32> to vector<2xf32>
    %4 = vector.shape_cast %3 : vector<2xf32> to vector<2x1xf32>
    %cst_4 = arith.constant 1.280000e+02 : f32
    %5 = vector.broadcast %cst_4 : f32 to vector<2x1xf32>
    %6 = arith.divf %4, %5 : vector<2x1xf32>
    %7 = vector.broadcast %6 : vector<2x1xf32> to vector<2x128xf32>
    %8 = arith.subf %0, %7 : vector<2x128xf32>
    %9 = arith.mulf %8, %8 : vector<2x128xf32>
    %cst_5 = arith.constant dense<0.000000e+00> : vector<2xf32>
    %10 = vector.multi_reduction <add>, %9, %cst_5 [1] : vector<2x128xf32> to vector<2xf32>
    %11 = vector.shape_cast %10 : vector<2xf32> to vector<2x1xf32>
    %cst_6 = arith.constant 1.280000e+02 : f32
    %12 = vector.broadcast %cst_6 : f32 to vector<2x1xf32>
    %13 = arith.divf %11, %12 : vector<2x1xf32>
    %cst_7 = arith.constant 9.99999974E-6 : f32
    %14 = vector.broadcast %cst_7 : f32 to vector<2x1xf32>
    %15 = arith.addf %13, %14 : vector<2x1xf32>
    %16 = math.rsqrt %15 : vector<2x1xf32>
    %17 = vector.broadcast %16 : vector<2x1xf32> to vector<2x128xf32>
    %18 = arith.mulf %8, %17 : vector<2x128xf32>
    %19 = vector.broadcast %1 : vector<1x128xf32> to vector<2x128xf32>
    %20 = arith.mulf %18, %19 : vector<2x128xf32>
    %21 = vector.broadcast %2 : vector<1x128xf32> to vector<2x128xf32>
    %22 = arith.addf %20, %21 : vector<2x128xf32>
    %c0_8 = arith.constant 0 : index
    %c0_9 = arith.constant 0 : index
    %23 = vector.load %arg3[%c0_8, %c0_9] : memref<128x128xf32, #tpu.memory_space<vmem>>, vector<128x128xf32>
    %cst_10 = arith.constant dense<0.000000e+00> : vector<2x128xf32>
    %24 = tpu.matmul %22, %23, %cst_10 {dimension_numbers = #tpu.dot_dimension_numbers<[1], [0], [0], [1], [0, 0, 1, 1], [], []>} : vector<2x128xf32>, vector<128x128xf32>, vector<2x128xf32> -> vector<2x128xf32>
    %c0_11 = arith.constant 0 : index
    %c0_12 = arith.constant 0 : index
    %25 = vector.load %arg4[%c0_11, %c0_12] : memref<1x128xf32, #tpu.memory_space<vmem>>, vector<1x128xf32>
    %26 = vector.broadcast %25 : vector<1x128xf32> to vector<2x128xf32>
    %27 = arith.addf %24, %26 : vector<2x128xf32>
    %c0_13 = arith.constant 0 : index
    %c0_14 = arith.constant 0 : index
    %28 = vector.load %arg5[%c0_13, %c0_14] : memref<2x128xf32, #tpu.memory_space<vmem>>, vector<2x128xf32>
    tpu.vector_store %arg5[%c0_13, %c0_14], %27 {strides = array<i32>} : memref<2x128xf32, #tpu.memory_space<vmem>>, vector<2x128xf32>,
    return
  }
  func.func @transform_0(%arg0: i32) -> (i32, i32) {
    %c0_i32 = arith.constant 0 : i32
    %c0_i32_0 = arith.constant 0 : i32
    return %arg0, %c0_i32 : i32, i32
  }
  func.func @transform_1(%arg0: i32) -> (i32, i32) {
    %c0_i32 = arith.constant 0 : i32
    %c0_i32_0 = arith.constant 0 : i32
    %c0_i32_1 = arith.constant 0 : i32
    return %c0_i32, %c0_i32_0 : i32, i32
  }
  func.func @transform_2(%arg0: i32) -> (i32, i32) {
    %c0_i32 = arith.constant 0 : i32
    %c0_i32_0 = arith.constant 0 : i32
    %c0_i32_1 = arith.constant 0 : i32
    return %c0_i32, %c0_i32_0 : i32, i32
  }
  func.func @transform_3(%arg0: i32) -> (i32, i32) {
    %c0_i32 = arith.constant 0 : i32
    %c0_i32_0 = arith.constant 0 : i32
    %c0_i32_1 = arith.constant 0 : i32
    return %c0_i32, %c0_i32_0 : i32, i32
  }
  func.func @transform_4(%arg0: i32) -> (i32, i32) {
    %c0_i32 = arith.constant 0 : i32
    %c0_i32_0 = arith.constant 0 : i32
    return %arg0, %c0_i32 : i32, i32
  }
}

</mosaic_0001>

<bundles_post_ra>
// kernel: tpu_custom_call.1
= control target key start
LH: loop header
LB: loop body
LE: loop exit
PB: predicated region body
PF: predicated region fallthrough
CT: control target
= control target key end

     0   :  { %9 = vsyncpa [#allocation3], 0  ;;  %s322_s0 = inlined_call_operand.hbm [shape: f32[2,128], index: 0, kind: input, shape index: {}]   ;;  %s323_s1 = inlined_call_operand.hbm [shape: f32[2,128], index: 1, kind: input, shape index: {}]   ;;  %s324_s2 = inlined_call_operand.hbm [shape: f32[128,128], index: 2, kind: input, shape index: {}]   ;;  %s325_s3 = inlined_call_operand.vmem [shape: f32[1,128], index: 3, kind: input, shape index: {}]   ;;  %s326_s4 = inlined_call_operand.hbm [shape: f32[2,128], index: 4, kind: output, shape index: {}]  }
   0x1   :  { %10 = vsyncpa [#allocation6], 0  ;;  %s28_s17 = sshll.u32 %s323_s1, 4  ;;  %s29_s17 = int_to_ptr.hbm [resolvable:$true] %s28_s17 }
   0x2   :  { %11 = vsyncpa [#allocation4], 0  ;;  %s273_s18 = smov [#allocation5]   ;;  %s17_s22 = sshll.u32 %s322_s0, 4  ;;  %s18_s22 = int_to_ptr.hbm [resolvable:$true] %s17_s22 }
   0x3   :  { %s30_s19 = sshll.u32 %s273_s18, 4  ;;  %s274_s23 = smov [#allocation2]   ;;  %s31_s19 = int_to_ptr.vmem [resolvable:$true] %s30_s19 }
   0x4   :  { %33 = dma.hbm_to_vmem [thread:$0]  %s29_s17, 32, %s31_s19, [#allocation6]  }
   0x5   :  { %s19_s24 = sshll.u32 %s274_s23, 4  ;;  %s38_s27 = sshll.u32 %s324_s2, 4  ;;  %s20_s24 = int_to_ptr.vmem [resolvable:$true] %s19_s24  ;;  %s39_s27 = int_to_ptr.hbm [resolvable:$true] %s38_s27 }
   0x6   :  { %22 = dma.hbm_to_vmem [thread:$0]  %s18_s22, 32, %s20_s24, [#allocation3]  }
   0x7   :  { %s275_s1 = smov [#allocation7]   ;;  %s276_s29 = smov 128  }
   0x8   :  { %s40_s28 = sshll.u32 %s275_s1, 4  ;;  %s277_s30 = smov 8   ;;  %s41_s28 = int_to_ptr.vmem [resolvable:$true] %s40_s28 }
   0x9   :  { %46 = dma.hbm_to_vmem [thread:$0]  %s39_s27, 2048, %s41_s28, [#allocation6], %s276_s29, %s276_s29, %s277_s30  }
   0xa   :  { %267 = dma.done.wait [#allocation3], 32  }
   0xb   :  { %268 = vsyncadd [#allocation3], 4294967264 }
   0xc   :  { %269 = dma.done.wait [#allocation6], 2080  }
   0xd   :  { %270 = vsyncadd [#allocation6], 4294965216  ;;  %vm64_vm0 = vcmask 1041408   ;;  %v61_v0 = vld [vmem:[#allocation2] sm:$0x3]  ;;  %v278_v2 = vmov 128.0  }
   0xe   :  { %v65_v1 = vsel %vm64_vm0, %v61_v0, 0.0  ;;  %167 = vrcp.f32 %v278_v2  ;;  %v113_v3 = vld [vmem:[#allocation7 + $0x78] sm:$0xff]  ;;  %v112_v4 = vld [vmem:[#allocation7 + $0x70] sm:$0xff]  ;;  %v111_v16 = vld [vmem:[#allocation7 + $0x68] sm:$0xff]  ;;  %s279_s5 = smov [#allocation8]   ;;  %s146_s9 = sshll.u32 %s326_s4, 4  ;;  %s147_s9 = int_to_ptr.hbm [resolvable:$true] %s146_s9 }
   0xf   :  { %66 = vadd.xlane.f32.xlu0 %v65_v1  ;;  %118 = vmatpush.msra.mxu0 %v113_v3  ;;  %v110_v17 = vld [vmem:[#allocation7 + $0x60] sm:$0xff]  ;;  %v109_v18 = vld [vmem:[#allocation7 + $0x58] sm:$0xff]  ;;  %v108_v19 = vld [vmem:[#allocation7 + $0x50] sm:$0xff]  ;;  %s144_s6 = sshll.u32 %s279_s5, 4  ;;  %s145_s6 = int_to_ptr.vmem [resolvable:$true] %s144_s6 }
  0x10   :  { %v107_v20 = vld [vmem:[#allocation7 + $0x48] sm:$0xff]  ;;  %v106_v21 = vld [vmem:[#allocation7 + $0x40] sm:$0xff]  ;;  %v105_v22 = vld [vmem:[#allocation7 + $0x38] sm:$0xff] }
  0x11   :  { %119 = vmatpush.msra.mxu0 %v112_v4  ;;  %v104_v23 = vld [vmem:[#allocation7 + $0x30] sm:$0xff]  ;;  %v103_v24 = vld [vmem:[#allocation7 + $0x28] sm:$0xff]  ;;  %v102_v25 = vld [vmem:[#allocation7 + $0x20] sm:$0xff] }
  0x12   :  { %v101_v26 = vld [vmem:[#allocation7 + $0x18] sm:$0xff]  ;;  %v100_v27 = vld [vmem:[#allocation7 + $0x10] sm:$0xff]  ;;  %v99_v28 = vld [vmem:[#allocation7 + $0x8] sm:$0xff] }
  0x13   :  { %120 = vmatpush.msra.mxu0 %v111_v16  ;;  %v98_v29 = vld [vmem:[#allocation7] sm:$0xff]  ;;  %v164_v39 = vld [vmem:[#allocation5] ss:$0 sm:$0xff]  ;;  %v165_v42 = vld [vmem:[#allocation5 + $0x1] ss:$0 sm:$0xff] }
  0x14   :  { %v168_v5 = vpop.eup %167  ;;  %v166_v45 = vld [vmem:[%s325_s3] ss:$0 sm:$0xff] }
  0x15   :  { %v69_v6 = vmul.f32 128.0, %v168_v5  ;;  %vm73_vm1 = vweird.f32 %v168_v5  ;;  %121 = vmatpush.msra.mxu0 %v110_v17 }
  0x17   :  { %v70_v7 = vsub.f32 1.0, %v69_v6  ;;  %122 = vmatpush.msra.mxu0 %v109_v18 }
  0x19   :  { %v71_v8 = vmul.f32 %v168_v5, %v70_v7  ;;  %123 = vmatpush.msra.mxu0 %v108_v19 }
  0x1b   :  { %v72_v9 = vadd.f32 %v168_v5, %v71_v8  ;;  %124 = vmatpush.msra.mxu0 %v107_v20 }
  0x1d   :  { %v74_v10 = vsel %vm73_vm1, %v168_v5, %v72_v9  ;;  %125 = vmatpush.msra.mxu0 %v106_v21 }
  0x1f   :  { %126 = vmatpush.msra.mxu0 %v105_v22 }
  0x21   :  { %127 = vmatpush.msra.mxu0 %v104_v23 }
  0x23   :  { %128 = vmatpush.msra.mxu0 %v103_v24 }
  0x25   :  { %129 = vmatpush.msra.mxu0 %v102_v25 }
  0x27   :  { %130 = vmatpush.msra.mxu0 %v101_v26 }
  0x29   :  { %131 = vmatpush.msra.mxu0 %v100_v27 }
  0x2b   :  { %132 = vmatpush.msra.mxu0 %v99_v28 }
  0x2d   :  { %133 = vmatpush.msra.mxu0 %v98_v29 }
  0x82   :  { %v67_v11 = vpop.xlane.xlu0 %66 }
  0x83   :  { %v75_v12 = vmul.f32 %v74_v10, %v67_v11 }
  0x85   :  { %v76_v13 = vsub.f32 %v61_v0, %v75_v12 }
  0x87   :  { %v77_v14 = vmul.f32 %v76_v13, %v76_v13 }
  0x89   :  { %v78_v15 = vsel %vm64_vm0, %v77_v14, 0.0 }
  0x8a   :  { %79 = vadd.xlane.f32.xlu0 %v78_v15 }
  0xfd   :  { %v80_v30 = vpop.xlane.xlu0 %79 }
  0xfe   :  { %v81_v31 = vmul.f32 %v80_v30, %v74_v10 }
 0x100   :  { %v82_v32 = vadd.f32 1e-05, %v81_v31 }
 0x102   :  { %169 = vrsqrt.f32 %v82_v32  ;;  %vm89_vm3 = vweird.f32 %v82_v32 }
 0x108   :  { %v170_v33 = vpop.eup %169 }
 0x109   :  { %v84_v34 = vmul.f32 %v170_v33, %v82_v32  ;;  %vm90_vm2 = vweird.f32 %v170_v33 }
 0x10a   :  { %vm91_vm4 = vmor %vm89_vm3, %vm90_vm2 }
 0x10b   :  { %v85_v35 = vmul.f32 %v170_v33, %v84_v34 }
 0x10d   :  { %v86_v36 = vmul.f32 0.5, %v85_v35 }
 0x10f   :  { %v87_v37 = vsub.f32 1.5, %v86_v36 }
 0x111   :  { %v88_v38 = vmul.f32 %v170_v33, %v87_v37 }
 0x113   :  { %v92_v40 = vsel %vm91_vm4, %v170_v33, %v88_v38 }
 0x114   :  { %v93_v41 = vmul.f32 %v92_v40, %v76_v13 }
 0x116   :  { %v95_v43 = vmul.f32 %v164_v39, %v93_v41 }
 0x118   :  { %v97_v44 = vadd.f32 %v165_v42, %v95_v43 }
 0x11a   :  { %134 = vmatmul.f32.vlgmr.msra.gmra.mxu0 %v97_v44 }
 0x197   :  { %v135_v46 = vpop.f32.mrf.mxu0 }
 0x198   :  { %v136_v47 = vadd.f32 %v166_v45, %v135_v46 }
 0x19a   :  { %138 = vst [vmem:[#allocation8] sm:$0x3] %v136_v47 }
 0x19b   :  { %149 = dma.vmem_to_hbm [thread:$0]  %s145_s6, 32, %s147_s9, [#allocation4]  }
 0x19c   :  { %271 = dma.done.wait [#allocation4], 32  }
 0x19d   :  { %272 = vsyncadd [#allocation4], 4294967264 }
 0x19e   :  { %154 = vsyncpa [#allocation3], 1 }
 0x19f   :  { %155 = vsyncpa [#allocation6], 1 }
 0x1a0   :  { %156 = vsyncpa [#allocation4], 1 }

</bundles_post_ra>
